<compile_context>
chip_gen: v5e
topology: v5e:2x2
jax: 0.10.0
libtpu: 0.0.40
codegen_flags: <defaults>
</compile_context>

<pallas_src>
import functools
import math

import jax
import jax.numpy as jnp
from jax import lax
from jax.experimental import pallas as pl
from jax.experimental.pallas import tpu as pltpu

_MIB = 1024 * 1024


def _round_up(x, m):
    return ((x + m - 1) // m) * m


def _sublane(dtype):
    itemsize = jnp.dtype(dtype).itemsize
    if itemsize >= 4:
        return 8
    if itemsize == 2:
        return 16
    return 32


def _vmem_capacity_bytes():
    try:
        return int(pltpu.get_tpu_info().vmem_capacity_bytes)
    except Exception:
        return 64 * _MIB  # conservative fallback (v7x per-TensorCore size)


def _lnprob_kernel(s_ref, rf_ref, o_ref):
    """o[b, p_block] += s[b, k_tile] . rf[p_block, k_tile], relu on the last K step.

    The output BlockSpec maps every K step to the same P block, so o_ref is the
    resident f32 accumulator along the sequential reduction axis.
    """
    k = pl.program_id(1)

    @pl.when(k == 0)
    def _():
        o_ref[...] = jnp.zeros_like(o_ref)

    # (B_pad, tk) x (tp, tk) contracted over the lane (K) axis -> (B_pad, tp).
    # Keeping K on the lane axis of BOTH operands means the static RF is never
    # transposed or padded out to 128 lanes when P is small.
    o_ref[...] += lax.dot_general(
        s_ref[...],
        rf_ref[...],
        dimension_numbers=(((1,), (1,)), ((), ())),
        preferred_element_type=jnp.float32,
    )

    @pl.when(k == pl.num_programs(1) - 1)
    def _():
        o_ref[...] = jnp.maximum(o_ref[...], 0.0)  # nonlinearity = relu


def make_lnprob(receptive_fields, *, compute_dtype=jnp.bfloat16,
                pipeline_step_bytes=4 * _MIB):
    """Build LNProb forward callables for fixed receptive fields.

    All static RF preprocessing (flatten, cast, pad) happens exactly once here.
    Returns (rates_fn, forward_fn): rates_fn(s) -> (B, P) f32 relu-rates,
    forward_fn(s, key) -> (B, P) f32 Poisson spike counts.
    """
    P = receptive_fields.shape[0]
    K = math.prod(receptive_fields.shape[1:])
    itemsize = jnp.dtype(compute_dtype).itemsize
    sub = _sublane(compute_dtype)

    # Pad P only to the sublane multiple (NOT to 128): for small populations this
    # keeps the dominant streamed operand (RF) at its natural size. Large P gets
    # 256-wide blocks to match the v6e/v7x MXU and to expose a parallel grid axis.
    if P > 256:
        P_pad = _round_up(P, 256)
        tp = 256
    else:
        P_pad = _round_up(max(P, 1), sub)
        tp = P_pad
    K_pad = _round_up(K, 128)

    rf = receptive_fields.reshape(P, K).astype(compute_dtype)
    if (P_pad, K_pad) != (P, K):
        rf = jnp.pad(rf, ((0, P_pad - P), (0, K_pad - K)))
    rf = jax.block_until_ready(rf)  # preprocess the static operand once, eagerly
    rf_shape5 = receptive_fields.shape
    # TODO(synk): on v7x, optionally quantize the static RF operand to fp8 with a
    # per-population f32 scale applied after the dot for another ~2x HBM cut.

    def _build(B):
        B_pad = _round_up(max(B, 1), sub)
        out_bytes = B_pad * P_pad * 4              # resident f32 output block
        col_bytes = (B_pad + tp) * itemsize        # streamed input bytes per K column

        vmem_cap = _vmem_capacity_bytes()          # 128 MiB on v5e/v6e, 64 MiB/TC on v7x
        vmem_limit = int(min(vmem_cap // 2, 48 * _MIB))
        in_budget = max(vmem_limit - out_bytes - 2 * _MIB, 2 * col_bytes * 128)

        # Per-step cap (~4 MiB of inputs) keeps >=2 grid steps for large K so the
        # software pipeline overlaps the next tile's DMA with the current matmul.
        tk_budget = (in_budget // (2 * col_bytes)) // 128 * 128   # double-buffered
        tk_pipe = (pipeline_step_bytes // col_bytes) // 128 * 128
        tk_limit = max(min(tk_budget, tk_pipe), 128)

        # Largest 128-multiple divisor of K_pad within the limit: balanced tiles,
        # K padding bounded at 127 elements, no per-call RF re-padding.
        m = K_pad // 128
        d_max = max(min(m, tk_limit // 128), 1)
        d = next(dd for dd in range(d_max, 0, -1) if m % dd == 0)
        tk = 128 * d

        grid = (P_pad // tp, K_pad // tk)

        call = pl.pallas_call(
            _lnprob_kernel,
            out_shape=jax.ShapeDtypeStruct((B_pad, P_pad), jnp.float32),
            grid=grid,
            in_specs=[
                pl.BlockSpec((B_pad, tk), lambda p, k: (0, k)),  # stimulus K-tile
                pl.BlockSpec((tp, tk), lambda p, k: (p, k)),     # RF (P-block, K-tile)
            ],
            out_specs=pl.BlockSpec((B_pad, tp), lambda p, k: (0, p)),
            compiler_params=pltpu.CompilerParams(
                # P blocks are independent -> split across TensorCores on v7x;
                # K is the sequential reduction into the resident output block.
                dimension_semantics=("parallel", "arbitrary"),
                vmem_limit_bytes=vmem_limit,
            ),
        )
        return call, B_pad
        # TODO(synk): for very large B also tile B with a second parallel axis and
        # a bounded resident accumulator (matters once B_pad*P_pad*4 nears VMEM).

    @jax.jit
    def _rates_impl(rf_arr, s):
        B = s.shape[0]
        call, B_pad = _build(B)
        s_flat = s.reshape(B, K).astype(compute_dtype)
        if (B_pad, K_pad) != (B, K):            # skip the pad when already aligned
            s_flat = jnp.pad(s_flat, ((0, B_pad - B), (0, K_pad - K)))
        out = call(s_flat, rf_arr)
        return out[:B, :P]

    def rates_fn(s):
        assert s.shape[1:] == rf_shape5[1:], "stimulus / receptive-field shape mismatch"
        return _rates_impl(rf, s)

    def forward_fn(s, key):
        rates = rates_fn(s)
        # TODO(synk): noise_correlations path (MultivariateNormal noise scaled by
        # interim.mean()) is not implemented; module is built with None.
        spikes = jax.random.poisson(key, rates)  # pyro.sample('spikes', Poisson(rates))
        return spikes.astype(jnp.float32)

    return rates_fn, forward_fn


if __name__ == "__main__":
    # Small shapes consistent with the module:
    #   batch=2, population_size=4, timesteps=8, spatial=16x16 -> K = 8*16*16 = 2048
    B, P, T, H, W = 2, 4, 8, 16, 16

    key = jax.random.PRNGKey(0)
    k_s, k_rf, k_poisson = jax.random.split(key, 3)

    s = jax.random.normal(k_s, (B, 1, T, H, W), dtype=jnp.float32)
    receptive_fields = 0.05 * jax.random.normal(
        k_rf, (P, 1, T, H, W), dtype=jnp.float32
    )

    # RF preprocessing is done once here; subsequent calls only touch `s`.
    rates_fn, forward_fn = make_lnprob(receptive_fields)

    spikes = jax.block_until_ready(forward_fn(s, k_poisson))
    rates = jax.block_until_ready(rates_fn(s))

    # Reference of the deterministic hot path with the same bf16 operand cast
    # (the kernel streams bf16 operands and accumulates in f32).
    s_c = s.astype(jnp.bfloat16).astype(jnp.float32).reshape(B, -1)
    rf_c = receptive_fields.astype(jnp.bfloat16).astype(jnp.float32).reshape(P, -1)
    ref = jnp.maximum(s_c @ rf_c.T, 0.0)

    assert spikes.shape == (B, P)
    assert rates.shape == (B, P)
    assert jnp.allclose(rates, ref, atol=1e-2, rtol=1e-2)

    print("KERNEL_OK")
</pallas_src>

<mosaic_0001>
module attributes {stable_mosaic.version = 11 : i64} {
  func.func @_lnprob_kernel(%arg0: i32, %arg1: i32, %arg2: memref<16x2048xbf16, #tpu.memory_space<vmem>>, %arg3: memref<16x2048xbf16, #tpu.memory_space<vmem>>, %arg4: memref<16x16xf32, #tpu.memory_space<vmem>>) attributes {dimension_semantics = [#tpu.dimension_semantics<parallel>, #tpu.dimension_semantics<arbitrary>], iteration_bounds = array<i64: 1, 1>, scalar_prefetch = 0 : i64, scratch_operands = 0 : i64, tpu.core_type = #tpu.core_type<tc>, window_params = [{transform_indices = @transform_0, window_bounds = array<i64: 16, 2048>}, {transform_indices = @transform_1, window_bounds = array<i64: 16, 2048>}, {transform_indices = @transform_2, window_bounds = array<i64: 16, 16>}]} {
    %c0_i32 = arith.constant 0 : i32
    %0 = arith.cmpi eq, %arg1, %c0_i32 : i32
    %1 = arith.extui %0 : i1 to i32
    %c0_i32_0 = arith.constant 0 : i32
    %2 = arith.cmpi ne, %1, %c0_i32_0 : i32
    scf.if %2 {
      %cst_10 = arith.constant 0.000000e+00 : f32
      %12 = vector.broadcast %cst_10 : f32 to vector<16x16xf32>
      %c0_11 = arith.constant 0 : index
      %c0_12 = arith.constant 0 : index
      %13 = vector.load %arg4[%c0_11, %c0_12] : memref<16x16xf32, #tpu.memory_space<vmem>>, vector<16x16xf32>
      tpu.vector_store %arg4[%c0_11, %c0_12], %12 {strides = array<i32>} : memref<16x16xf32, #tpu.memory_space<vmem>>, vector<16x16xf32>,
    } else {
    }
    %c0 = arith.constant 0 : index
    %c0_1 = arith.constant 0 : index
    %3 = vector.load %arg4[%c0, %c0_1] : memref<16x16xf32, #tpu.memory_space<vmem>>, vector<16x16xf32>
    %c0_2 = arith.constant 0 : index
    %c0_3 = arith.constant 0 : index
    %4 = vector.load %arg2[%c0_2, %c0_3] : memref<16x2048xbf16, #tpu.memory_space<vmem>>, vector<16x2048xbf16>
    %c0_4 = arith.constant 0 : index
    %c0_5 = arith.constant 0 : index
    %5 = vector.load %arg3[%c0_4, %c0_5] : memref<16x2048xbf16, #tpu.memory_space<vmem>>, vector<16x2048xbf16>
    %cst = arith.constant dense<0.000000e+00> : vector<16x16xf32>
    %6 = tpu.matmul %4, %5, %cst {dimension_numbers = #tpu.dot_dimension_numbers<[1], [1], [0], [0], [0, 0, 1, 0], [], []>} : vector<16x2048xbf16>, vector<16x2048xbf16>, vector<16x16xf32> -> vector<16x16xf32>
    %7 = arith.addf %3, %6 : vector<16x16xf32>
    %c0_6 = arith.constant 0 : index
    %c0_7 = arith.constant 0 : index
    %8 = vector.load %arg4[%c0_6, %c0_7] : memref<16x16xf32, #tpu.memory_space<vmem>>, vector<16x16xf32>
    tpu.vector_store %arg4[%c0_6, %c0_7], %7 {strides = array<i32>} : memref<16x16xf32, #tpu.memory_space<vmem>>, vector<16x16xf32>,
    %c0_i32_8 = arith.constant 0 : i32
    %9 = arith.cmpi eq, %arg1, %c0_i32_8 : i32
    %10 = arith.extui %9 : i1 to i32
    %c0_i32_9 = arith.constant 0 : i32
    %11 = arith.cmpi ne, %10, %c0_i32_9 : i32
    scf.if %11 {
      %c0_10 = arith.constant 0 : index
      %c0_11 = arith.constant 0 : index
      %12 = vector.load %arg4[%c0_10, %c0_11] : memref<16x16xf32, #tpu.memory_space<vmem>>, vector<16x16xf32>
      %cst_12 = arith.constant 0.000000e+00 : f32
      %13 = vector.broadcast %cst_12 : f32 to vector<16x16xf32>
      %14 = arith.maximumf %12, %13 : vector<16x16xf32>
      %c0_13 = arith.constant 0 : index
      %c0_14 = arith.constant 0 : index
      %15 = vector.load %arg4[%c0_13, %c0_14] : memref<16x16xf32, #tpu.memory_space<vmem>>, vector<16x16xf32>
      tpu.vector_store %arg4[%c0_13, %c0_14], %14 {strides = array<i32>} : memref<16x16xf32, #tpu.memory_space<vmem>>, vector<16x16xf32>,
    } else {
    }
    return
  }
  func.func @transform_0(%arg0: i32, %arg1: i32) -> (i32, i32) {
    %c0_i32 = arith.constant 0 : i32
    %c0_i32_0 = arith.constant 0 : i32
    return %c0_i32, %arg1 : i32, i32
  }
  func.func @transform_1(%arg0: i32, %arg1: i32) -> (i32, i32) {
    %c0_i32 = arith.constant 0 : i32
    return %arg0, %arg1 : i32, i32
  }
  func.func @transform_2(%arg0: i32, %arg1: i32) -> (i32, i32) {
    %c0_i32 = arith.constant 0 : i32
    %c0_i32_0 = arith.constant 0 : i32
    return %c0_i32, %arg0 : i32, i32
  }
}

</mosaic_0001>

<bundles_post_ra>
// kernel: _rates_impl.1
= control target key start
LH: loop header
LB: loop body
LE: loop exit
PB: predicated region body
PF: predicated region fallthrough
CT: control target
= control target key end

     0   :  { %vm16_vm0 = vcmask 130048   ;;  %s860_s1 = inlined_call_operand.vmem [shape: bf16[16,2048], index: 1, kind: input, shape index: {}]   ;;  %s861_s0 = inlined_call_operand.vmem [shape: bf16[16,2048], index: 0, kind: input, shape index: {}]   ;;  %s862_s2 = inlined_call_operand.vmem [shape: f32[16,16], index: 2, kind: output, shape index: {}]  }
   0x1   :  { %v521_v0 = vld [vmem:[%s860_s1] sm:$0xf]  ;;  %v599_v2 = vld [vmem:[%s860_s1 + $0x4] sm:$0xf]  ;;  %v529_v5 = vld [vmem:[%s860_s1 + $0x8] sm:$0xf] }
   0x2   :  { %v607_v1 = vld [vmem:[%s860_s1 + $0x3c] sm:$0xf0]  ;;  %v523_v4 = vld [vmem:[%s860_s1 + $0x40] sm:$0xf0]  ;;  %v608_v6 = vld [vmem:[%s860_s1 + $0x44] sm:$0xf0] }
   0x3   :  { %v522_v3 = vor.u32 %v607_v1, %v521_v0  ;;  %v526_v7 = vor.u32 %v599_v2, %v523_v4  ;;  %v530_v8 = vor.u32 %v608_v6, %v529_v5  ;;  %v600_v9 = vld [vmem:[%s860_s1 + $0xc] sm:$0xf]  ;;  %v457_v11 = vld [vmem:[%s861_s0] sm:$0xf]  ;;  %v583_v14 = vld [vmem:[%s861_s0 + $0x4] sm:$0xf] }
   0x4   :  { %v531_v10 = vld [vmem:[%s860_s1 + $0x48] sm:$0xf0]  ;;  %v591_v13 = vld [vmem:[%s861_s0 + $0x3c] sm:$0xf0]  ;;  %v459_v15 = vld [vmem:[%s861_s0 + $0x40] sm:$0xf0] }
   0x5   :  { %220 = vmatpush.bf16.xpose.msra.mxu0 %v522_v3  ;;  %v534_v12 = vor.u32 %v600_v9, %v531_v10  ;;  %234 = vmatpush.bf16.xpose.msra.mxu1 %v526_v7  ;;  %v465_v16 = vld [vmem:[%s861_s0 + $0x8] sm:$0xf]  ;;  %v584_v18 = vld [vmem:[%s861_s0 + $0xc] sm:$0xf]  ;;  %v545_v20 = vld [vmem:[%s860_s1 + $0x18] sm:$0xf]  ;;  %v458_v22 = vor.u32 %v591_v13, %v457_v11  ;;  %v462_v27 = vor.u32 %v583_v14, %v459_v15 }
   0x6   :  { %248 = vmatpush.bf16.xpose.msra.mxu2 %v530_v8  ;;  %v592_v17 = vld [vmem:[%s861_s0 + $0x44] sm:$0xf0]  ;;  %v467_v19 = vld [vmem:[%s861_s0 + $0x48] sm:$0xf0]  ;;  %v610_v21 = vld [vmem:[%s860_s1 + $0x54] sm:$0xf0] }
   0x7   :  { %262 = vmatpush.bf16.xpose.msra.mxu3 %v534_v12  ;;  %v546_v23 = vor.u32 %v610_v21, %v545_v20  ;;  %v537_v24 = vld [vmem:[%s860_s1 + $0x10] sm:$0xf]  ;;  %v602_v26 = vld [vmem:[%s860_s1 + $0x1c] sm:$0xf]  ;;  %v466_v28 = vor.u32 %v592_v17, %v465_v16  ;;  %v601_v31 = vld [vmem:[%s860_s1 + $0x14] sm:$0xf]  ;;  %v470_v33 = vor.u32 %v584_v18, %v467_v19 }
   0x8   :  { %v609_v25 = vld [vmem:[%s860_s1 + $0x4c] sm:$0xf0]  ;;  %v547_v30 = vld [vmem:[%s860_s1 + $0x58] sm:$0xf0]  ;;  %v539_v32 = vld [vmem:[%s860_s1 + $0x50] sm:$0xf0] }
   0x9   :  { %v538_v29 = vor.u32 %v609_v25, %v537_v24  ;;  %v550_v34 = vor.u32 %v602_v26, %v547_v30  ;;  %v542_v35 = vor.u32 %v601_v31, %v539_v32  ;;  %v561_v36 = vld [vmem:[%s860_s1 + $0x28] sm:$0xf]  ;;  %v553_v38 = vld [vmem:[%s860_s1 + $0x20] sm:$0xf]  ;;  %v604_v42 = vld [vmem:[%s860_s1 + $0x2c] sm:$0xf] }
   0xa   :  { %v612_v37 = vld [vmem:[%s860_s1 + $0x64] sm:$0xf0]  ;;  %v611_v39 = vld [vmem:[%s860_s1 + $0x5c] sm:$0xf0]  ;;  %v563_v43 = vld [vmem:[%s860_s1 + $0x68] sm:$0xf0] }
   0xb   :  { %v562_v40 = vor.u32 %v612_v37, %v561_v36  ;;  %v554_v41 = vor.u32 %v611_v39, %v553_v38  ;;  %v603_v44 = vld [vmem:[%s860_s1 + $0x24] sm:$0xf]  ;;  %v566_v45 = vor.u32 %v604_v42, %v563_v43  ;;  %v473_v48 = vld [vmem:[%s861_s0 + $0x10] sm:$0xf]  ;;  %v585_v50 = vld [vmem:[%s861_s0 + $0x14] sm:$0xf] }
   0xc   :  { %221 = vmatmul.bf16.vlgmr.msra.gmra.mxu0 %v458_v22  ;;  %235 = vmatmul.bf16.vlgmr.msra.gmra.mxu1 %v462_v27  ;;  %v555_v46 = vld [vmem:[%s860_s1 + $0x60] sm:$0xf0]  ;;  %v593_v49 = vld [vmem:[%s861_s0 + $0x4c] sm:$0xf0]  ;;  %v475_v51 = vld [vmem:[%s861_s0 + $0x50] sm:$0xf0] }
   0xd   :  { %276 = vmatpush.bf16.xpose.msrb.mxu0 %v538_v29  ;;  %249 = vmatmul.bf16.vlgmr.msra.gmra.mxu2 %v466_v28  ;;  %v558_v47 = vor.u32 %v603_v44, %v555_v46  ;;  %v481_v52 = vld [vmem:[%s861_s0 + $0x18] sm:$0xf]  ;;  %v586_v54 = vld [vmem:[%s861_s0 + $0x1c] sm:$0xf]  ;;  %v569_v58 = vld [vmem:[%s860_s1 + $0x30] sm:$0xf]  ;;  %v474_v59 = vor.u32 %v593_v49, %v473_v48  ;;  %v478_v63 = vor.u32 %v585_v50, %v475_v51 }
   0xe   :  { %304 = vmatpush.bf16.xpose.msrb.mxu2 %v546_v23  ;;  %263 = vmatmul.bf16.vlgmr.msra.gmra.mxu3 %v470_v33  ;;  %v594_v53 = vld [vmem:[%s861_s0 + $0x54] sm:$0xf0]  ;;  %v483_v55 = vld [vmem:[%s861_s0 + $0x58] sm:$0xf0]  ;;  %v613_v60 = vld [vmem:[%s860_s1 + $0x6c] sm:$0xf0] }
   0xf   :  { %318 = vmatpush.bf16.xpose.msrb.mxu3 %v550_v34  ;;  %290 = vmatpush.bf16.xpose.msrb.mxu1 %v542_v35  ;;  %v577_v56 = vld [vmem:[%s860_s1 + $0x38] sm:$0xf]  ;;  %v606_v61 = vld [vmem:[%s860_s1 + $0x3c] sm:$0xf]  ;;  %v482_v0 = vor.u32 %v594_v53, %v481_v52  ;;  %v605_v1 = vld [vmem:[%s860_s1 + $0x34] sm:$0xf]  ;;  %v486_v3 = vor.u32 %v586_v54, %v483_v55  ;;  %v570_v5 = vor.u32 %v613_v60, %v569_v58 }
  0x10   :  { %v614_v57 = vld [vmem:[%s860_s1 + $0x74] sm:$0xf0]  ;;  %v579_v62 = vld [vmem:[%s860_s1 + $0x78] sm:$0xf0]  ;;  %v571_v2 = vld [vmem:[%s860_s1 + $0x70] sm:$0xf0] }
  0x11   :  { %v578_v4 = vor.u32 %v614_v57, %v577_v56  ;;  %v582_v6 = vor.u32 %v606_v61, %v579_v62  ;;  %v574_v7 = vor.u32 %v605_v1, %v571_v2  ;;  %v489_v8 = vld [vmem:[%s861_s0 + $0x20] sm:$0xf]  ;;  %v587_v10 = vld [vmem:[%s861_s0 + $0x24] sm:$0xf]  ;;  %v497_v12 = vld [vmem:[%s861_s0 + $0x28] sm:$0xf] }
  0x12   :  { %v595_v9 = vld [vmem:[%s861_s0 + $0x5c] sm:$0xf0]  ;;  %v491_v11 = vld [vmem:[%s861_s0 + $0x60] sm:$0xf0]  ;;  %v596_v13 = vld [vmem:[%s861_s0 + $0x64] sm:$0xf0] }
  0x13   :  { %v588_v14 = vld [vmem:[%s861_s0 + $0x2c] sm:$0xf]  ;;  %v490_v16 = vor.u32 %v595_v9, %v489_v8  ;;  %v494_v17 = vor.u32 %v587_v10, %v491_v11  ;;  %v498_v18 = vor.u32 %v596_v13, %v497_v12  ;;  %v505_v20 = vld [vmem:[%s861_s0 + $0x30] sm:$0xf]  ;;  %v589_v22 = vld [vmem:[%s861_s0 + $0x34] sm:$0xf] }
  0x14   :  { %v499_v15 = vld [vmem:[%s861_s0 + $0x68] sm:$0xf0]  ;;  %v597_v21 = vld [vmem:[%s861_s0 + $0x6c] sm:$0xf0]  ;;  %v507_v23 = vld [vmem:[%s861_s0 + $0x70] sm:$0xf0] }
  0x15   :  { %332 = vmatpush.bf16.xpose.msra.mxu0 %v554_v41  ;;  %v502_v19 = vor.u32 %v588_v14, %v499_v15  ;;  %v513_v24 = vld [vmem:[%s861_s0 + $0x38] sm:$0xf]  ;;  %v590_v26 = vld [vmem:[%s861_s0 + $0x3c] sm:$0xf]  ;;  %v506_v28 = vor.u32 %v597_v21, %v505_v20  ;;  %v510_v29 = vor.u32 %v589_v22, %v507_v23  ;;  %v616_v44 = vmov 0.0  }
  0x16   :  { %360 = vmatpush.bf16.xpose.msra.mxu2 %v562_v40  ;;  %v598_v25 = vld [vmem:[%s861_s0 + $0x74] sm:$0xf0]  ;;  %v515_v27 = vld [vmem:[%s861_s0 + $0x78] sm:$0xf0]  ;;  %17 = vst.msk [vmem:[%s862_s2] sm:$0xff] %vm16_vm0, %v616_v44 }
  0x17   :  { %374 = vmatpush.bf16.xpose.msra.mxu3 %v566_v45  ;;  %346 = vmatpush.bf16.xpose.msra.mxu1 %v558_v47  ;;  %v514_v30 = vor.u32 %v598_v25, %v513_v24  ;;  %v518_v31 = vor.u32 %v590_v26, %v515_v27  ;;  %18 = vst.msk [vmem:[%s862_s2 + $0x8] sm:$0xff] %vm16_vm0, %v616_v44 }
  0x1c   :  { %277 = vmatmul.bf16.vlgmr.msrb.gmra.mxu0 %v474_v59  ;;  %291 = vmatmul.bf16.vlgmr.msrb.gmra.mxu1 %v478_v63 }
  0x1d   :  { %305 = vmatmul.bf16.vlgmr.msrb.gmra.mxu2 %v482_v0  ;;  %388 = vmatpush.bf16.xpose.msrb.mxu0 %v570_v5  ;;  %v19_v23 = vld [vmem:[%s862_s2] sm:$0xff] }
  0x1e   :  { %319 = vmatmul.bf16.vlgmr.msrb.gmra.mxu3 %v486_v3  ;;  %416 = vmatpush.bf16.xpose.msrb.mxu2 %v578_v4 }
  0x1f   :  { %430 = vmatpush.bf16.xpose.msrb.mxu3 %v582_v6  ;;  %402 = vmatpush.bf16.xpose.msrb.mxu1 %v574_v7 }
  0x2c   :  { %333 = vmatmul.bf16.vlgmr.msra.gmra.mxu0 %v490_v16  ;;  %347 = vmatmul.bf16.vlgmr.msra.gmra.mxu1 %v494_v17 }
  0x2d   :  { %361 = vmatmul.bf16.vlgmr.msra.gmra.mxu2 %v498_v18 }
  0x2e   :  { %375 = vmatmul.bf16.vlgmr.msra.gmra.mxu3 %v502_v19 }
  0x3c   :  { %389 = vmatmul.bf16.vlgmr.msrb.gmra.mxu0 %v506_v28  ;;  %403 = vmatmul.bf16.vlgmr.msrb.gmra.mxu1 %v510_v29 }
  0x3d   :  { %417 = vmatmul.bf16.vlgmr.msrb.gmra.mxu2 %v514_v30 }
  0x3e   :  { %431 = vmatmul.bf16.vlgmr.msrb.gmra.mxu3 %v518_v31  ;;  %v20_v31 = vld [vmem:[%s862_s2 + $0x8] sm:$0xff] }
  0x89   :  { %v222_v32 = vpop.f32.mrf.mxu0  ;;  %v236_v33 = vpop.f32.mrf.mxu1 }
  0x8a   :  { %v237_v42 = vadd.f32 %v236_v33, %v222_v32 }
  0x90   :  { %v250_v34 = vpop.f32.mrf.mxu2 }
  0x91   :  { %v264_v35 = vpop.f32.mrf.mxu3  ;;  %v224_v36 = vpop.f32.mrf.mxu0  ;;  %v251_v43 = vadd.f32 %v250_v34, %v237_v42 }
  0x92   :  { %v238_v37 = vpop.f32.mrf.mxu1 }
  0x93   :  { %v265_v46 = vadd.f32 %v264_v35, %v251_v43  ;;  %v239_v50 = vadd.f32 %v238_v37, %v224_v36 }
  0x98   :  { %v252_v38 = vpop.f32.mrf.mxu2 }
  0x99   :  { %v266_v39 = vpop.f32.mrf.mxu3  ;;  %v278_v40 = vpop.f32.mrf.mxu0  ;;  %v253_v52 = vadd.f32 %v252_v38, %v239_v50 }
  0x9a   :  { %v292_v41 = vpop.f32.mrf.mxu1  ;;  %v279_v51 = vadd.f32 %v278_v40, %v265_v46 }
  0x9b   :  { %v267_v55 = vadd.f32 %v266_v39, %v253_v52 }
  0x9c   :  { %v293_v53 = vadd.f32 %v292_v41, %v279_v51 }
  0xa0   :  { %v306_v45 = vpop.f32.mrf.mxu2 }
  0xa1   :  { %v320_v47 = vpop.f32.mrf.mxu3  ;;  %v280_v48 = vpop.f32.mrf.mxu0  ;;  %v307_v56 = vadd.f32 %v306_v45, %v293_v53 }
  0xa2   :  { %v294_v49 = vpop.f32.mrf.mxu1  ;;  %v281_v60 = vadd.f32 %v280_v48, %v267_v55 }
  0xa3   :  { %v321_v61 = vadd.f32 %v320_v47, %v307_v56 }
  0xa4   :  { %v295_v62 = vadd.f32 %v294_v49, %v281_v60 }
  0xa8   :  { %v308_v54 = vpop.f32.mrf.mxu2 }
  0xa9   :  { %v322_v57 = vpop.f32.mrf.mxu3  ;;  %v334_v58 = vpop.f32.mrf.mxu0  ;;  %v309_v1 = vadd.f32 %v308_v54, %v295_v62 }
  0xaa   :  { %v348_v59 = vpop.f32.mrf.mxu1  ;;  %v335_v63 = vadd.f32 %v334_v58, %v321_v61 }
  0xab   :  { %v323_v6 = vadd.f32 %v322_v57, %v309_v1 }
  0xac   :  { %v349_v5 = vadd.f32 %v348_v59, %v335_v63 }
  0xb0   :  { %v362_v0 = vpop.f32.mrf.mxu2 }
  0xb1   :  { %v376_v2 = vpop.f32.mrf.mxu3  ;;  %v336_v3 = vpop.f32.mrf.mxu0  ;;  %v363_v7 = vadd.f32 %v362_v0, %v349_v5 }
  0xb2   :  { %v350_v4 = vpop.f32.mrf.mxu1  ;;  %v337_v8 = vadd.f32 %v336_v3, %v323_v6 }
  0xb3   :  { %v377_v10 = vadd.f32 %v376_v2, %v363_v7 }
  0xb4   :  { %v351_v13 = vadd.f32 %v350_v4, %v337_v8 }
  0xb8   :  { %v364_v9 = vpop.f32.mrf.mxu2 }
  0xb9   :  { %v378_v11 = vpop.f32.mrf.mxu3  ;;  %v390_v12 = vpop.f32.mrf.mxu0  ;;  %v365_v16 = vadd.f32 %v364_v9, %v351_v13 }
  0xba   :  { %v391_v14 = vadd.f32 %v390_v12, %v377_v10  ;;  %v404_v15 = vpop.f32.mrf.mxu1 }
  0xbb   :  { %v379_v19 = vadd.f32 %v378_v11, %v365_v16 }
  0xbc   :  { %v405_v17 = vadd.f32 %v404_v15, %v391_v14 }
  0xc0   :  { %v418_v18 = vpop.f32.mrf.mxu2 }
  0xc1   :  { %v419_v20 = vadd.f32 %v418_v18, %v405_v17  ;;  %v432_v21 = vpop.f32.mrf.mxu3  ;;  %v392_v22 = vpop.f32.mrf.mxu0 }
  0xc2   :  { %v393_v25 = vadd.f32 %v392_v22, %v379_v19  ;;  %v406_v27 = vpop.f32.mrf.mxu1 }
  0xc3   :  { %v433_v24 = vadd.f32 %v432_v21, %v419_v20 }
  0xc4   :  { %v407_v28 = vadd.f32 %v406_v27, %v393_v25 }
  0xc5   :  { %v437_v26 = vadd.f32 %v433_v24, %v19_v23 }
  0xc7   :  { %440 = vst.msk [vmem:[%s862_s2] sm:$0xff] %vm16_vm0, %v437_v26 }
  0xc8   :  { %v420_v29 = vpop.f32.mrf.mxu2 }
  0xc9   :  { %v421_v30 = vadd.f32 %v420_v29, %v407_v28  ;;  %v434_v32 = vpop.f32.mrf.mxu3 }
  0xcb   :  { %v435_v33 = vadd.f32 %v434_v32, %v421_v30 }
  0xcd   :  { %v438_v34 = vadd.f32 %v435_v33, %v20_v31 }
  0xce   :  { %v445_v35 = vld [vmem:[%s862_s2] sm:$0xff] }
  0xcf   :  { %v447_v36 = vmax.f32 %v445_v35, 0.0  ;;  %441 = vst.msk [vmem:[%s862_s2 + $0x8] sm:$0xff] %vm16_vm0, %v438_v34 }
  0xd1   :  { %449 = vst.msk [vmem:[%s862_s2] sm:$0xff] %vm16_vm0, %v447_v36 }
  0xd6   :  { %v446_v37 = vld [vmem:[%s862_s2 + $0x8] sm:$0xff] }
  0xd7   :  { %v448_v38 = vmax.f32 %v446_v37, 0.0 }
  0xd9   :  { %450 = vst.msk [vmem:[%s862_s2 + $0x8] sm:$0xff] %vm16_vm0, %v448_v38 }

</bundles_post_ra>
